<compile_context>
chip_gen: v5e
topology: v5e:2x2
jax: 0.10.0
libtpu: 0.0.40
codegen_flags: <defaults>
</compile_context>

<pallas_src>
import jax
import jax.numpy as jnp
from jax.experimental import pallas as pl
from jax.experimental.pallas import tpu as pltpu


def _round_up(v, m):
    return ((v + m - 1) // m) * m


def _vmem_limit_bytes():
    """Per-generation scoped-VMEM budget (v5e/v6e: 128 MiB physical -> 96 MiB,
    v7x: 64 MiB physical -> 48 MiB). Conservative fallback if the query fails."""
    try:
        info = pltpu.get_tpu_info()
        cap = int(getattr(info, "vmem_capacity_bytes", 0) or 0)
        if cap > 0:
            return min((cap * 3) // 4, 96 << 20)
    except Exception:
        pass
    return 48 << 20  # safe on every generation (below v7x's 64 MiB physical)


def _choose_tile_s(S, C, itemsize, vmem_limit):
    """Lane tile for the two-pass path: multiple of 128, sized by bytes per
    block (>= ~1-4 MiB where possible) and bounded so the apply pass's live
    buffers (x 2-buf + out 2-buf + f32 temps) stay inside the VMEM budget."""
    s128 = _round_up(S, 128)
    per_lane = C * (4 * itemsize + 8)                       # bytes of VMEM per lane column
    mem_cap = max(128, ((int(vmem_limit * 0.6) // per_lane) // 128) * 128)
    target = _round_up(pl.cdiv(4 << 20, C * itemsize), 128)  # aim for ~4 MiB per x block
    tile = min(max(target, 128), 8192, mem_cap, s128)
    return max(128, (tile // 128) * 128)


def _cse_gate(pooled_col, w1t, b1_row, w2, b2_col):
    """cSE gate from the pooled (C,1) column, via VPU broadcasts + XLU reduces.
    hidden[0,r] = relu(sum_c w1[r,c]*pooled[c] + b1[r]);
    gate[c,0]   = sigmoid(sum_r w2[c,r]*hidden[r] + b2[c])."""
    hidden = jnp.maximum(
        jnp.sum(w1t * pooled_col, axis=0, keepdims=True) + b1_row, 0.0)   # (1, Cr)
    return jax.nn.sigmoid(
        jnp.sum(w2 * hidden, axis=1, keepdims=True) + b2_col)             # (C, 1)


def _make_pool_gate_kernel(S, tile, need_mask):
    """Pass 1: tiled spatial sum (AdaptiveAvgPool3d numerator) accumulated in
    the resident (C,1) output block; the tiny cSE FC chain runs once on the
    last S-step and overwrites the block with the final (C,1) gate."""
    inv_s = 1.0 / float(S)

    def kernel(x_ref, w1t_ref, b1_ref, w2_ref, b2_ref, gate_ref):
        s = pl.program_id(1)

        @pl.when(s == 0)
        def _():
            gate_ref[...] = jnp.zeros_like(gate_ref)

        x = x_ref[...].astype(jnp.float32)                                # (C, tile)
        if need_mask:
            lane = jax.lax.broadcasted_iota(jnp.int32, x.shape, 1)
            x = jnp.where(s * tile + lane < S, x, 0.0)                    # ragged tile
        gate_ref[...] += jnp.sum(x, axis=1, keepdims=True)                # (C, 1)

        @pl.when(s == pl.num_programs(1) - 1)
        def _():
            pooled = gate_ref[...] * inv_s
            gate_ref[...] = _cse_gate(pooled, w1t_ref[...], b1_ref[...],
                                      w2_ref[...], b2_ref[...])

    return kernel


def _apply_kernel(x_ref, gate_ref, ws_ref, bs_ref, o_ref):
    """Pass 2: per-tile sSE gate + fused combine with the precomputed cSE gate."""
    x = x_ref[...].astype(jnp.float32)                                    # (C, tile)
    sse = jax.nn.sigmoid(
        jnp.sum(x * ws_ref[...], axis=0, keepdims=True) + bs_ref[0])      # (1, tile)
    o_ref[...] = (x * (gate_ref[...] + sse)).astype(o_ref.dtype)


def _make_fused_kernel(S):
    """Single-pass fast path: pool + cSE FCs + sSE + combine; x read once."""
    inv_s = 1.0 / float(S)

    def kernel(x_ref, w1t_ref, b1_ref, w2_ref, b2_ref, ws_ref, bs_ref, o_ref):
        x = x_ref[...].astype(jnp.float32)                                # (C, S)
        pooled = jnp.sum(x, axis=1, keepdims=True) * inv_s                # (C, 1)
        cse = _cse_gate(pooled, w1t_ref[...], b1_ref[...],
                        w2_ref[...], b2_ref[...])                         # (C, 1)
        sse = jax.nn.sigmoid(
            jnp.sum(x * ws_ref[...], axis=0, keepdims=True) + bs_ref[0])  # (1, S)
        o_ref[...] = (x * (cse + sse)).astype(o_ref.dtype)

    return kernel


def scse_forward(x, w1, b1, w2, b2, ws, bs, *, tile_s=None, force_two_pass=False):
    """scSE forward. x: (N, C, D, H, W). Weights from the 1x1x1 Conv3d layers
    reshaped to 2D: w1 (Cr, C), b1 (Cr, 1), w2 (C, Cr), b2 (C, 1),
    ws (1, C), bs (1, 1)."""
    N, C, D, H, W = x.shape
    S = D * H * W
    Cr = w1.shape[0]

    xf = x.reshape(N, C, S)
    vmem_limit = _vmem_limit_bytes()
    itemsize = jnp.dtype(x.dtype).itemsize

    f32 = jnp.float32
    w1t = w1.T.astype(f32)                    # (C, Cr)
    b1r = b1.reshape(1, Cr).astype(f32)       # (1, Cr)
    w2m = w2.astype(f32)                      # (C, Cr)
    b2c = b2.reshape(C, 1).astype(f32)        # (C, 1)
    wsc = ws.reshape(C, 1).astype(f32)        # (C, 1)
    bss = bs.reshape(1).astype(f32)           # (1,) -> SMEM scalar

    # ---- single-pass fast path: (C, S) slab per batch element fits in VMEM ----
    fused_need = 4 * C * S * itemsize + 2 * C * S * 4 + (1 << 20)
    if not force_two_pass and fused_need <= int(vmem_limit * 0.9):
        out = pl.pallas_call(
            _make_fused_kernel(S),
            out_shape=jax.ShapeDtypeStruct((N, C, S), x.dtype),
            grid=(N,),
            in_specs=[
                pl.BlockSpec((None, C, S), lambda n: (n, 0, 0)),          # x slab
                pl.BlockSpec((C, Cr), lambda n: (0, 0)),                  # w1^T
                pl.BlockSpec((1, Cr), lambda n: (0, 0)),                  # b1 row
                pl.BlockSpec((C, Cr), lambda n: (0, 0)),                  # w2
                pl.BlockSpec((C, 1), lambda n: (0, 0)),                   # b2 col
                pl.BlockSpec((C, 1), lambda n: (0, 0)),                   # Ws col
                pl.BlockSpec(memory_space=pltpu.MemorySpace.SMEM),        # bs scalar
            ],
            out_specs=pl.BlockSpec((None, C, S), lambda n: (n, 0, 0)),
            compiler_params=pltpu.CompilerParams(
                dimension_semantics=("parallel",),
                vmem_limit_bytes=vmem_limit),
        )(xf, w1t, b1r, w2m, b2c, wsc, bss)
        return out.reshape(N, C, D, H, W)

    # ---- two-pass path: tiled pool+gate, then tiled apply ----
    if tile_s is None:
        tile = _choose_tile_s(S, C, itemsize, vmem_limit)
    else:
        tile = max(128, (min(tile_s, _round_up(S, 128)) // 128) * 128)
    n_tiles = pl.cdiv(S, tile)
    need_mask = (S % tile) != 0

    gate = pl.pallas_call(
        _make_pool_gate_kernel(S, tile, need_mask),
        out_shape=jax.ShapeDtypeStruct((N, C, 1), jnp.float32),
        grid=(N, n_tiles),
        in_specs=[
            pl.BlockSpec((None, C, tile), lambda n, s: (n, 0, s)),        # x tiles
            pl.BlockSpec((C, Cr), lambda n, s: (0, 0)),                   # w1^T
            pl.BlockSpec((1, Cr), lambda n, s: (0, 0)),                   # b1 row
            pl.BlockSpec((C, Cr), lambda n, s: (0, 0)),                   # w2
            pl.BlockSpec((C, 1), lambda n, s: (0, 0)),                    # b2 col
        ],
        out_specs=pl.BlockSpec((None, C, 1), lambda n, s: (n, 0, 0)),
        compiler_params=pltpu.CompilerParams(
            dimension_semantics=("parallel", "arbitrary"),
            vmem_limit_bytes=vmem_limit),
    )(xf, w1t, b1r, w2m, b2c)

    out = pl.pallas_call(
        _apply_kernel,
        out_shape=jax.ShapeDtypeStruct((N, C, S), x.dtype),
        grid=(N, n_tiles),
        in_specs=[
            pl.BlockSpec((None, C, tile), lambda n, s: (n, 0, s)),        # x tiles
            pl.BlockSpec((None, C, 1), lambda n, s: (n, 0, 0)),           # cSE gate
            pl.BlockSpec((C, 1), lambda n, s: (0, 0)),                    # Ws col
            pl.BlockSpec(memory_space=pltpu.MemorySpace.SMEM),            # bs scalar
        ],
        out_specs=pl.BlockSpec((None, C, tile), lambda n, s: (n, 0, s)),
        compiler_params=pltpu.CompilerParams(
            dimension_semantics=("parallel", "parallel"),
            vmem_limit_bytes=vmem_limit),
    )(xf, gate, wsc, bss)

    return out.reshape(N, C, D, H, W)


def _reference(x, w1, b1, w2, b2, ws, bs):
    N, C, D, H, W = x.shape
    xf = x.reshape(N, C, -1).astype(jnp.float32)
    pooled = jnp.mean(xf, axis=2)                                         # (N, C)
    h = jnp.maximum(pooled @ w1.T + b1[:, 0], 0.0)                        # (N, Cr)
    cse = jax.nn.sigmoid(h @ w2.T + b2[:, 0])                             # (N, C)
    sse = jax.nn.sigmoid(jnp.einsum('ncs,oc->nos', xf, ws) + bs[0, 0])    # (N,1,S)
    out = xf * cse[:, :, None] + xf * sse
    return out.reshape(N, C, D, H, W).astype(x.dtype)


if __name__ == "__main__":
    # Small deterministic problem: N=2, C=32, D=4, H=10, W=16 -> S = 640.
    # Default call exercises the single-pass fast path; the forced two-pass
    # call with tile_s=256 exercises multi-tile accumulation and the ragged
    # last-tile mask (640 = 256 + 256 + 128).
    N, C, D, H, W = 2, 32, 4, 10, 16
    reduction = 16
    Cr = (C + reduction - 1) // reduction                                 # = 2

    key = jax.random.PRNGKey(0)
    kx, k1, k2, k3, k4, k5, k6 = jax.random.split(key, 7)

    x = jax.random.normal(kx, (N, C, D, H, W), dtype=jnp.float32)

    # Conv3d(., ., kernel_size=1) weights reshaped to 2D matrices.
    w1 = jax.random.normal(k1, (Cr, C), dtype=jnp.float32) * 0.2
    b1 = jax.random.normal(k2, (Cr, 1), dtype=jnp.float32) * 0.1
    w2 = jax.random.normal(k3, (C, Cr), dtype=jnp.float32) * 0.2
    b2 = jax.random.normal(k4, (C, 1), dtype=jnp.float32) * 0.1
    ws = jax.random.normal(k5, (1, C), dtype=jnp.float32) * 0.2
    bs = jax.random.normal(k6, (1, 1), dtype=jnp.float32) * 0.1

    ref = _reference(x, w1, b1, w2, b2, ws, bs)

    out_fast = scse_forward(x, w1, b1, w2, b2, ws, bs)
    out_fast = jax.block_until_ready(out_fast)
    assert out_fast.shape == x.shape and out_fast.dtype == x.dtype
    assert jnp.allclose(out_fast, ref, atol=1e-5, rtol=1e-5), "fast path mismatch"

    out_2p = scse_forward(x, w1, b1, w2, b2, ws, bs,
                          tile_s=256, force_two_pass=True)
    out_2p = jax.block_until_ready(out_2p)
    assert out_2p.shape == x.shape and out_2p.dtype == x.dtype
    assert jnp.allclose(out_2p, ref, atol=1e-5, rtol=1e-5), "two-pass mismatch"

    print("KERNEL_OK")
</pallas_src>

<mosaic_0001>
module attributes {stable_mosaic.version = 11 : i64} {
  func.func @kernel(%arg0: i32, %arg1: memref<1x32x640xf32, #tpu.memory_space<vmem>>, %arg2: memref<32x2xf32, #tpu.memory_space<vmem>>, %arg3: memref<1x2xf32, #tpu.memory_space<vmem>>, %arg4: memref<32x2xf32, #tpu.memory_space<vmem>>, %arg5: memref<32x1xf32, #tpu.memory_space<vmem>>, %arg6: memref<32x1xf32, #tpu.memory_space<vmem>>, %arg7: memref<1xf32, #tpu.memory_space<smem>>, %arg8: memref<1x32x640xf32, #tpu.memory_space<vmem>>) attributes {dimension_semantics = [#tpu.dimension_semantics<parallel>], iteration_bounds = array<i64: 2>, scalar_prefetch = 0 : i64, scratch_operands = 0 : i64, tpu.core_type = #tpu.core_type<tc>, window_params = [{transform_indices = @transform_0, window_bounds = array<i64: 1, 32, 640>}, {pipeline_mode = #tpu.pipeline_mode<synchronous>, transform_indices = @transform_1, window_bounds = array<i64: 32, 2>}, {pipeline_mode = #tpu.pipeline_mode<synchronous>, transform_indices = @transform_2, window_bounds = array<i64: 1, 2>}, {pipeline_mode = #tpu.pipeline_mode<synchronous>, transform_indices = @transform_3, window_bounds = array<i64: 32, 2>}, {pipeline_mode = #tpu.pipeline_mode<synchronous>, transform_indices = @transform_4, window_bounds = array<i64: 32, 1>}, {pipeline_mode = #tpu.pipeline_mode<synchronous>, transform_indices = @transform_5, window_bounds = array<i64: 32, 1>}, {transform_indices = @transform_6, window_bounds = array<i64: 1>}, {transform_indices = @transform_7, window_bounds = array<i64: 1, 32, 640>}]} {
    %c0 = arith.constant 0 : index
    %c0_0 = arith.constant 0 : index
    %c0_1 = arith.constant 0 : index
    %0 = vector.load %arg1[%c0, %c0_0, %c0_1] : memref<1x32x640xf32, #tpu.memory_space<vmem>>, vector<1x32x640xf32>
    %1 = vector.shape_cast %0 : vector<1x32x640xf32> to vector<32x640xf32>
    %cst = arith.constant dense<0.000000e+00> : vector<32xf32>
    %2 = vector.multi_reduction <add>, %1, %cst [1] : vector<32x640xf32> to vector<32xf32>
    %3 = vector.shape_cast %2 : vector<32xf32> to vector<32x1xf32>
    %cst_2 = arith.constant 1.562500e-03 : f32
    %4 = vector.broadcast %cst_2 : f32 to vector<32x1xf32>
    %5 = arith.mulf %3, %4 : vector<32x1xf32>
    %c0_3 = arith.constant 0 : index
    %c0_4 = arith.constant 0 : index
    %6 = vector.load %arg2[%c0_3, %c0_4] : memref<32x2xf32, #tpu.memory_space<vmem>>, vector<32x2xf32>
    %c0_5 = arith.constant 0 : index
    %c0_6 = arith.constant 0 : index
    %7 = vector.load %arg3[%c0_5, %c0_6] : memref<1x2xf32, #tpu.memory_space<vmem>>, vector<1x2xf32>
    %c0_7 = arith.constant 0 : index
    %c0_8 = arith.constant 0 : index
    %8 = vector.load %arg4[%c0_7, %c0_8] : memref<32x2xf32, #tpu.memory_space<vmem>>, vector<32x2xf32>
    %c0_9 = arith.constant 0 : index
    %c0_10 = arith.constant 0 : index
    %9 = vector.load %arg5[%c0_9, %c0_10] : memref<32x1xf32, #tpu.memory_space<vmem>>, vector<32x1xf32>
    %10 = vector.broadcast %5 : vector<32x1xf32> to vector<32x2xf32>
    %11 = arith.mulf %6, %10 : vector<32x2xf32>
    %cst_11 = arith.constant dense<0.000000e+00> : vector<2xf32>
    %12 = vector.multi_reduction <add>, %11, %cst_11 [0] : vector<32x2xf32> to vector<2xf32>
    %13 = vector.shape_cast %12 : vector<2xf32> to vector<1x2xf32>
    %14 = arith.addf %13, %7 : vector<1x2xf32>
    %cst_12 = arith.constant 0.000000e+00 : f32
    %15 = vector.broadcast %cst_12 : f32 to vector<1x2xf32>
    %16 = arith.maximumf %14, %15 : vector<1x2xf32>
    %17 = vector.broadcast %16 : vector<1x2xf32> to vector<32x2xf32>
    %18 = arith.mulf %8, %17 : vector<32x2xf32>
    %cst_13 = arith.constant dense<0.000000e+00> : vector<32xf32>
    %19 = vector.multi_reduction <add>, %18, %cst_13 [1] : vector<32x2xf32> to vector<32xf32>
    %20 = vector.shape_cast %19 : vector<32xf32> to vector<32x1xf32>
    %21 = arith.addf %20, %9 : vector<32x1xf32>
    %22 = arith.negf %21 : vector<32x1xf32>
    %23 = math.exp %22 : vector<32x1xf32>
    %cst_14 = arith.constant 1.000000e+00 : f32
    %24 = vector.broadcast %cst_14 : f32 to vector<32x1xf32>
    %25 = arith.addf %24, %23 : vector<32x1xf32>
    %26 = arith.divf %24, %25 : vector<32x1xf32>
    %c0_15 = arith.constant 0 : index
    %c0_16 = arith.constant 0 : index
    %27 = vector.load %arg6[%c0_15, %c0_16] : memref<32x1xf32, #tpu.memory_space<vmem>>, vector<32x1xf32>
    %28 = vector.broadcast %27 : vector<32x1xf32> to vector<32x640xf32>
    %29 = arith.mulf %1, %28 : vector<32x640xf32>
    %cst_17 = arith.constant dense<0.000000e+00> : vector<640xf32>
    %30 = vector.multi_reduction <add>, %29, %cst_17 [0] : vector<32x640xf32> to vector<640xf32>
    %31 = vector.shape_cast %30 : vector<640xf32> to vector<1x640xf32>
    %c0_18 = arith.constant 0 : index
    %32 = memref.load %arg7[%c0_18] : memref<1xf32, #tpu.memory_space<smem>>
    %33 = vector.broadcast %32 : f32 to vector<1x640xf32>
    %34 = arith.addf %31, %33 : vector<1x640xf32>
    %35 = arith.negf %34 : vector<1x640xf32>
    %36 = math.exp %35 : vector<1x640xf32>
    %cst_19 = arith.constant 1.000000e+00 : f32
    %37 = vector.broadcast %cst_19 : f32 to vector<1x640xf32>
    %38 = arith.addf %37, %36 : vector<1x640xf32>
    %39 = arith.divf %37, %38 : vector<1x640xf32>
    %40 = vector.broadcast %26 : vector<32x1xf32> to vector<32x640xf32>
    %41 = vector.broadcast %39 : vector<1x640xf32> to vector<32x640xf32>
    %42 = arith.addf %40, %41 : vector<32x640xf32>
    %43 = arith.mulf %1, %42 : vector<32x640xf32>
    %c0_20 = arith.constant 0 : index
    %c0_21 = arith.constant 0 : index
    %c0_22 = arith.constant 0 : index
    %44 = vector.load %arg8[%c0_20, %c0_21, %c0_22] : memref<1x32x640xf32, #tpu.memory_space<vmem>>, vector<1x32x640xf32>
    %45 = vector.shape_cast %44 : vector<1x32x640xf32> to vector<32x640xf32>
    %46 = vector.shape_cast %43 : vector<32x640xf32> to vector<1x32x640xf32>
    tpu.vector_store %arg8[%c0_20, %c0_21, %c0_22], %46 {strides = array<i32>} : memref<1x32x640xf32, #tpu.memory_space<vmem>>, vector<1x32x640xf32>,
    return
  }
  func.func @transform_0(%arg0: i32) -> (i32, i32, i32) {
    %c0_i32 = arith.constant 0 : i32
    %c0_i32_0 = arith.constant 0 : i32
    %c0_i32_1 = arith.constant 0 : i32
    return %arg0, %c0_i32, %c0_i32_0 : i32, i32, i32
  }
  func.func @transform_1(%arg0: i32) -> (i32, i32) {
    %c0_i32 = arith.constant 0 : i32
    %c0_i32_0 = arith.constant 0 : i32
    %c0_i32_1 = arith.constant 0 : i32
    return %c0_i32, %c0_i32_0 : i32, i32
  }
  func.func @transform_2(%arg0: i32) -> (i32, i32) {
    %c0_i32 = arith.constant 0 : i32
    %c0_i32_0 = arith.constant 0 : i32
    %c0_i32_1 = arith.constant 0 : i32
    return %c0_i32, %c0_i32_0 : i32, i32
  }
  func.func @transform_3(%arg0: i32) -> (i32, i32) {
    %c0_i32 = arith.constant 0 : i32
    %c0_i32_0 = arith.constant 0 : i32
    %c0_i32_1 = arith.constant 0 : i32
    return %c0_i32, %c0_i32_0 : i32, i32
  }
  func.func @transform_4(%arg0: i32) -> (i32, i32) {
    %c0_i32 = arith.constant 0 : i32
    %c0_i32_0 = arith.constant 0 : i32
    %c0_i32_1 = arith.constant 0 : i32
    return %c0_i32, %c0_i32_0 : i32, i32
  }
  func.func @transform_5(%arg0: i32) -> (i32, i32) {
    %c0_i32 = arith.constant 0 : i32
    %c0_i32_0 = arith.constant 0 : i32
    %c0_i32_1 = arith.constant 0 : i32
    return %c0_i32, %c0_i32_0 : i32, i32
  }
  func.func @transform_6(%arg0: i32) -> i32 {
    %c0_i32 = arith.constant 0 : i32
    %c0_i32_0 = arith.constant 0 : i32
    return %c0_i32 : i32
  }
  func.func @transform_7(%arg0: i32) -> (i32, i32, i32) {
    %c0_i32 = arith.constant 0 : i32
    %c0_i32_0 = arith.constant 0 : i32
    %c0_i32_1 = arith.constant 0 : i32
    return %arg0, %c0_i32, %c0_i32_0 : i32, i32, i32
  }
}

</mosaic_0001>

<bundles_post_ra>
// kernel: tpu_custom_call.1
= control target key start
LH: loop header
LB: loop body
LE: loop exit
PB: predicated region body
PF: predicated region fallthrough
CT: control target
= control target key end

     0   :  { %s1564_s0 = inlined_call_operand.hbm [shape: f32[2,32,640], index: 0, kind: input, shape index: {}]   ;;  %s1565_s1 = inlined_call_operand.vmem [shape: f32[32,2], index: 1, kind: input, shape index: {}]   ;;  %s1566_s2 = inlined_call_operand.vmem [shape: f32[1,2], index: 2, kind: input, shape index: {}]   ;;  %s1567_s3 = inlined_call_operand.vmem [shape: f32[32,2], index: 3, kind: input, shape index: {}]   ;;  %s1568_s4 = inlined_call_operand.vmem [shape: f32[32,1], index: 4, kind: input, shape index: {}]   ;;  %s1569_s5 = inlined_call_operand.vmem [shape: f32[32,1], index: 5, kind: input, shape index: {}]   ;;  %s1570_s6 = inlined_call_operand.<no memory space> [shape: f32[1], index: 6, kind: input, shape index: {}]   ;;  %s1571_s7 = inlined_call_operand.hbm [shape: f32[2,32,640], index: 7, kind: output, shape index: {}]  }
   0x1   :  { %12 = sst [smem:[#allocation2]] %s1570_s6 }
   0x2   :  { %13 = vsyncpa [#allocation4], 0 }
   0x3   :  { %15 = vsyncpa [#allocation4 + $0x1], 0 }
   0x4   :  { %16 = vsyncpa [#allocation5], 0 }
   0x5   :  { %18 = vsyncpa [#allocation5 + $0x1], 0  ;;  %s1095_s26 = smov 0   ;;  %s1097_s27 = smov 0  }
   0x6   :  { %s1099_s28 = smov 0   ;;  %s1101_s29 = smov 0  }
   0x7 LB: > { %s1116_s6 = sadd.s32 4294967295, %s1045_s29   ;;  %s838_s30 = sadd.s32 4294967294, %s1045_s29   ;;  %s1045_s29 = sphi %s1101_s29, %s1595_s29   ;;  %s1041_s28 = sphi %s1099_s28, %s1594_s28   ;;  %s1037_s27 = sphi %s1097_s27, %s1593_s27   ;;  %s1033_s26 = sphi %s1095_s26, %s1592_s26  }
   0x8   : > { %s1120_s8 = sadd.s32 1, %s1045_s29   ;;  %s31_s9 = sadd.s32 1, %s1041_s28 }
   0x9   : > { %s28_s10 = ssub.s32 %s1045_s29, %s1120_s8  ;;  %p38_p0 = scmp.ne.s32.totalorder %s1041_s28, %s1037_s27 }
   0xa   : > { %p29_p1 = scmp.eq.s32.totalorder %s28_s10, 0  ;;  %p39_p2 = scmp.eq.s32.totalorder %s1045_s29, 0 }
   0xb   : > { %p44_p3 = scmp.ne.s32.totalorder %s1037_s27, %s1033_s26  ;;  %p45_p4 = scmp.eq.s32.totalorder %s1116_s6, 0 }
   0xc   : > { %s1132_s11 = scalar_select %p29_p1, %s1041_s28, %s31_s9  }
   0xd   : > { %p40_p5 = por %p39_p2, %p38_p0  ;;  %p1134_p6 = por %p45_p4, %p44_p3 }
   0xe   : > { %1572 = sst [smem:[#allocation9_spill]] %s1132_s11  ;;  %p194_p7 = scmp.eq.s32.totalorder %s1116_s6, 1 }
   0xf   : > { %p200_p8 = scmp.eq.s32.totalorder %s838_s30, 1  ;;  %p840_p9 = scmp.ge.s32.totalorder %s1045_s29, 2 }
  0x10   : > { %p871_p10 = scmp.lt.s32.totalorder %s1045_s29, 2  ;;  %p1141_p11 = por %p194_p7, %p38_p0 }
  0x11   : > { %p1145_p12 = por %p200_p8, %p44_p3  ;;  %s238_s15 = sand.u32 1, %s1041_s28  }
  0x12   : > { %s856_s16 = smul.u32 160, %s1045_s29  ;;  %p1154_p13 = pnand %p871_p10, %p40_p5 }
  0x13   : > { %s855_s17 = smul.u32 160, %s238_s15  ;;  %s239_s25 = scalar_lea.sflag [#allocation4], %s238_s15 }
  0x14   : > { %s247_s20 = scalar_lea.hbm %s1564_s0, %s856_s16  ;;  %p953_p1 = pneg %p1154_p13 }
  0x15   : > { %s248_s22 = sshll.u32 %s247_s20, 4  ;;  %s242_s23 = scalar_lea.vmem [#allocation3], %s855_s17  ;;  %s249_s22 = int_to_ptr.hbm [resolvable:$true] %s248_s22 }
  0x16   : > { %s250_s24 = sshll.u32 %s242_s23, 4  ;;  %s949_s30 = sshra.s32 %s249_s22, 4  ;;  %s251_s24 = int_to_ptr.vmem [resolvable:$true] %s250_s24  ;;  %s950_s30 = int_to_ptr.hbm [resolvable:$true] %s949_s30 }
  0x17   : > { %s951_s9 = scalar_lea.hbm %s950_s30, 160  ;;  %s956_s18 = scalar_lea.hbm %s1564_s0, 320 }
  0x18   : > { %p952_p0 = scmp.ne.s32.totalorder %s950_s30, %s951_s9  ;;  %p957_p4 = scmp.lt.s32.totalorder %s950_s30, %s1564_s0 }
  0x19   : > { %p958_p5 = scmp.lt.s32.totalorder %s956_s18, %s951_s9 }
  0x1a   : > { %p954_p2 = pnand %p953_p1, %p952_p0 }
  0x1b   : > { %p959_p7 = por %p958_p5, %p957_p4 }
  0x1c   : > { %p955_p3 = pneg %p954_p2 }
  0x1e   : > { %p960_p8 = pnand %p959_p7, %p955_p3 }
  0x20   : > { %963 = shalt.err (!%p960_p8)
}
  0x21   : > { %s1047_s15 = smov 640   ;;  %s1048_s17 = smov 40  }
  0x22   : > { %866 = dma.hbm_to_vmem [thread:$0]  (!%p1154_p13), %s249_s22, 2560, %s251_s24, %s239_s25, %s1047_s15, %s1047_s15, %s1048_s17  }
  0x23   : > { %p842_p10 = scmp.ge.s32.totalorder %s1045_s29, 1  ;;  %p258_p0 = scmp.lt.s32.totalorder %s1045_s29, 3 }
  0x25   : > { %p259_p1 = pnand %p842_p10, %p258_p0 }
  0x26   : > { %s1171_s20 = sand.u32 (!%p259_p1), 1, %s1037_s27  }
  0x27   : > { %262 = sbr.rel (%p259_p1) target bundleno = 502 (0x1f6), region = 48  ;;  %s265_s23 = scalar_lea.sflag (!%p259_p1), [#allocation4], %s1171_s20 }
  0x28   : > { %s857_s11 = smul.u32 (!%p259_p1), 160, %s1171_s20 }
  0x2a   : > { %s1177_s30 = scalar_lea.vmem (!%p259_p1), [#allocation3], %s857_s11 }
  0x2c   : > { %1024 = dma.done.wait (%p1134_p6), %s265_s23, 2560  }
  0x2d   : > { %1026 = vsyncadd (%p1134_p6), %s265_s23, 4294964736  ;;  %v1049_v0 = vmov 0   ;;  %v1184_v1 = vld [vmem:[%s1177_s30] sm:$0xff]  ;;  %v1187_v2 = vld [vmem:[%s1177_s30 + $0x8] sm:$0xff]  ;;  %vm365_vm0 = vcmask 15360   ;;  %s567_s10 = sld [smem:[#allocation2]] }
  0x2e   : > { %910 = vset.pattern.permute.xlu2 %v1049_v0  ;;  %911 = vset.pattern.permute.xlu0 %v1049_v0  ;;  %v1190_v3 = vld [vmem:[%s1177_s30 + $0x10] sm:$0xff]  ;;  %v320_v4 = vadd.f32 %v1187_v2, %v1184_v1  ;;  %v1198_v6 = vld [vmem:[%s1177_s30 + $0x18] sm:$0xff]  ;;  %v1204_v8 = vld [vmem:[%s1177_s30 + $0x60] sm:$0xff]  ;;  %s1493_s16 = scalar_lea.vmem [#allocation6], %s857_s11  ;;  %s858_s11 = smul.u32 160, %s1116_s6 }
  0x2f   : > { %912 = vset.pattern.permute.xlu1 %v1049_v0  ;;  %v1195_v5 = vld [vmem:[%s1177_s30 + $0x50] sm:$0xff]  ;;  %v1201_v7 = vld [vmem:[%s1177_s30 + $0x58] sm:$0xff]  ;;  %v1210_v11 = vld [vmem:[%s1177_s30 + $0x28] sm:$0xff]  ;;  %s762_s6 = sshll.u32 %s1493_s16, 4  ;;  %s750_s23 = scalar_lea.sflag [#allocation5], %s1171_s20  ;;  %s763_s6 = int_to_ptr.vmem [resolvable:$true] %s762_s6 }
  0x30   : > { %v321_v9 = vadd.f32 %v320_v4, %v1190_v3  ;;  %v332_v10 = vadd.f32 %v1201_v7, %v1195_v5  ;;  %v1213_v12 = vld [vmem:[%s1177_s30 + $0x30] sm:$0xff]  ;;  %v1216_v13 = vld [vmem:[%s1177_s30 + $0x20] sm:$0xff]  ;;  %v1219_v14 = vld [vmem:[%s1177_s30 + $0x68] sm:$0xff]  ;;  %s761_s15 = scalar_lea.hbm %s1571_s7, %s858_s11  ;;  %s999_s24 = scalar_lea.hbm %s1571_s7, 320 }
  0x31   : > { %v1222_v15 = vld [vmem:[%s1177_s30 + $0x38] sm:$0xff]  ;;  %v326_v16 = vadd.f32 %v1213_v12, %v1210_v11  ;;  %v1232_v20 = vld [vmem:[%s1177_s30 + $0x80] sm:$0xff]  ;;  %v1235_v21 = vld [vmem:[%s1177_s30 + $0x88] sm:$0xff]  ;;  %s764_s17 = sshll.u32 %s761_s15, 4  ;;  %s765_s17 = int_to_ptr.hbm [resolvable:$true] %s764_s17 }
  0x32   : > { %v322_v17 = vadd.f32 %v321_v9, %v1198_v6  ;;  %v333_v18 = vadd.f32 %v332_v10, %v1204_v8  ;;  %v1229_v19 = vld [vmem:[%s1177_s30 + $0x78] sm:$0xff]  ;;  %v1238_v22 = vld [vmem:[%s1177_s30 + $0x70] sm:$0xff]  ;;  %v1241_v23 = vld [vmem:[%s1177_s30 + $0x40] sm:$0xff] }
  0x33   : > { %v327_v24 = vadd.f32 %v326_v16, %v1222_v15  ;;  %v338_v25 = vadd.f32 %v1232_v20, %v1229_v19  ;;  %v478_v26 = vld [vmem:[%s1569_s5] sm:$0xff]  ;;  %v1252_v29 = vld [vmem:[%s1177_s30 + $0x90] sm:$0xff]  ;;  %v1258_v33 = vld [vmem:[%s1177_s30 + $0x48] sm:$0xff] }
  0x34   : > { %v323_v27 = vadd.f32 %v322_v17, %v1216_v13  ;;  %v334_v28 = vadd.f32 %v333_v18, %v1219_v14  ;;  %484 = vperm.xlu2 %910, %v478_v26   ;;  %v1262_v35 = vld [vmem:[%s1177_s30 + $0x98] sm:$0xff]  ;;  %v348_v41 = vld [vmem:[%s1565_s1] sm:$0xff]  ;;  %v350_v43 = vld [vmem:[%s1565_s1 + $0x10] sm:$0xff]  ;;  %s993_s30 = sshra.s32 %s765_s17, 4  ;;  %s994_s30 = int_to_ptr.hbm [resolvable:$true] %s993_s30 }
  0x35   : > { %v339_v30 = vadd.f32 %v338_v25, %v1235_v21  ;;  %v328_v32 = vadd.f32 %v327_v24, %v1241_v23  ;;  %v349_v44 = vld [vmem:[%s1565_s1 + $0x8] sm:$0xff]  ;;  %v351_v48 = vld [vmem:[%s1565_s1 + $0x18] sm:$0xff]  ;;  %v352_v9 = vld [vmem:[%s1566_s2] sm:$0x1]  ;;  %s995_s12 = scalar_lea.hbm %s994_s30, 160  ;;  %p1000_p3 = scmp.lt.s32.totalorder %s994_s30, %s1571_s7 }
  0x36   : > { %324 = vadd.xlane.f32.xlu0 %v323_v27  ;;  %v335_v31 = vadd.f32 %v334_v28, %v1238_v22  ;;  %v356_v18 = vld [vmem:[%s1567_s3 + $0x18] sm:$0xff]  ;;  %v355_v24 = vld [vmem:[%s1567_s3 + $0x10] sm:$0xff]  ;;  %v353_v25 = vld [vmem:[%s1567_s3] sm:$0xff]  ;;  %p996_p6 = scmp.ne.s32.totalorder %s994_s30, %s995_s12  ;;  %p1001_p4 = scmp.lt.s32.totalorder %s999_s24, %s995_s12 }
  0x37   : > { %v340_v34 = vadd.f32 %v339_v30, %v1252_v29  ;;  %v329_v36 = vadd.f32 %v328_v32, %v1258_v33 }
  0x38   : > { %336 = vadd.xlane.f32.xlu1 %v335_v31  ;;  %p997_p13 = pnand %p996_p6, %p1141_p11  ;;  %p1002_p5 = por %p1001_p4, %p1000_p3 }
  0x39   : > { %v341_v37 = vadd.f32 %v340_v34, %v1262_v35 }
  0x3a   : > { %p998_p2 = pneg %p997_p13 }
  0x3c   : > { %p1003_p7 = pnand %p1002_p5, %p998_p2 }
  0x3e   : > { %330 = vadd.xlane.f32.xlu0 %v329_v36  ;;  %v354_v36 = vld [vmem:[%s1567_s3 + $0x8] sm:$0xff] }
  0x40   : > { %342 = vadd.xlane.f32.xlu1 %v341_v37 }
  0xa9   : > { %v325_v38 = vpop.xlane.xlu0 %324 }
  0xaa   : > { %v344_v40 = vmul.f32 0.0015625, %v325_v38 }
  0xab   : > { %v337_v39 = vpop.xlane.xlu1 %336 }
  0xac   : > { %v346_v42 = vmul.f32 0.0015625, %v337_v39  ;;  %v361_v46 = vmul.f32 %v348_v41, %v344_v40  ;;  %v479_v39 = vld [vmem:[%s1569_s5 + $0x8] sm:$0xff]  ;;  %v480_v40 = vld [vmem:[%s1569_s5 + $0x10] sm:$0xff]  ;;  %v481_v41 = vld [vmem:[%s1569_s5 + $0x18] sm:$0xff] }
  0xae   : > { %v363_v50 = vmul.f32 %v350_v43, %v346_v42  ;;  %v366_v53 = vsel %vm365_vm0, %v361_v46, 0.0  ;;  %v485_v42 = vpop.permute.xlu2 %484  ;;  %v359_v43 = vld [vmem:[%s1568_s4 + $0x10] sm:$0xff] }
  0xb0   : > { %v369_v57 = vsel %vm365_vm0, %v363_v50, 0.0 }
  0xb1   : > { %v331_v45 = vpop.xlane.xlu0 %330 }
  0xb2   : > { %v345_v47 = vmul.f32 0.0015625, %v331_v45  ;;  %v360_v45 = vld [vmem:[%s1568_s4 + $0x18] sm:$0xff] }
  0xb3   : > { %v343_v49 = vpop.xlane.xlu1 %342 }
  0xb4   : > { %v362_v51 = vmul.f32 %v349_v44, %v345_v47  ;;  %v347_v52 = vmul.f32 0.0015625, %v343_v49  ;;  %v357_v44 = vld [vmem:[%s1568_s4] sm:$0xff] }
  0xb6   : > { %v367_v54 = vsel %vm365_vm0, %v362_v51, 0.0  ;;  %v364_v55 = vmul.f32 %v351_v48, %v347_v52 }
  0xb7   : > { %v368_v56 = vadd.f32 %v367_v54, %v366_v53 }
  0xb8   : > { %v371_v58 = vsel %vm365_vm0, %v364_v55, 0.0  ;;  %v358_v55 = vld [vmem:[%s1568_s4 + $0x8] sm:$0xff] }
  0xb9   : > { %v370_v59 = vadd.f32 %v369_v57, %v368_v56 }
  0xbb   : > { %v372_v60 = vadd.f32 %v371_v58, %v370_v59 }
  0xbd   : > { %v373_v61 = vrot.slane %v372_v60, 4 }
  0xbf   : > { %v374_v62 = vadd.f32 %v373_v61, %v372_v60 }
  0xc1   : > { %v375_v63 = vrot.slane %v374_v62, 2 }
  0xc3   : > { %v376_v0 = vadd.f32 %v375_v63, %v374_v62 }
  0xc5   : > { %v377_v4 = vrot.slane %v376_v0, 1 }
  0xc7   : > { %v378_v10 = vadd.f32 %v377_v4, %v376_v0 }
  0xc9   : > { %v379_v16 = vadd.f32 %v378_v10, %v352_v9 }
  0xcb   : > { %v380_v17 = vmax.f32 %v379_v16, 0.0 }
  0xcd   : > { %v381_v26 = vperm.slane %v380_v17, 0 }
  0xcf   : > { %v385_v27 = vmul.f32 %v381_v26, %v356_v18  ;;  %v384_v28 = vmul.f32 %v381_v26, %v355_v24  ;;  %v382_v30 = vmul.f32 %v381_v26, %v353_v25  ;;  %v383_v37 = vmul.f32 %v381_v26, %v354_v36 }
  0xd1   : > { %v395_v31 = vsel %vm365_vm0, %v385_v27, 0.0  ;;  %v392_v32 = vsel %vm365_vm0, %v384_v28, 0.0  ;;  %v386_v34 = vsel %vm365_vm0, %v382_v30, 0.0  ;;  %v389_v38 = vsel %vm365_vm0, %v383_v37, 0.0 }
  0xd2   : > { %396 = vadd.xlane.f32.xlu1 %v395_v31  ;;  %393 = vadd.xlane.f32.xlu0 %v392_v32  ;;  %v502_v28 = vmul.f32 %v485_v42, %v1184_v1 }
  0xd3   : > { %387 = vadd.xlane.f32.xlu2 %v386_v34 }
  0xdb   : > { %390 = vadd.xlane.f32.xlu2 %v389_v38  ;;  %v503_v38 = vmul.f32 %v485_v42, %v1187_v2 }
  0xe6   : > { %489 = vperm.xlu0 %911, %v479_v39   ;;  %v504_v39 = vmul.f32 %v485_v42, %v1190_v3 }
  0xeb   : > { %494 = vperm.xlu1 %912, %v480_v40   ;;  %v505_v40 = vmul.f32 %v485_v42, %v1198_v6 }
  0xf3   : > { %499 = vperm.xlu2 %910, %v481_v41  }
 0x145   : > { %v397_v46 = vpop.xlane.xlu1 %396  ;;  %v394_v47 = vpop.xlane.xlu0 %393 }
 0x146   : > { %v400_v48 = vadd.f32 %v394_v47, %v359_v43  ;;  %v388_v49 = vpop.xlane.xlu2 %387  ;;  %v401_v51 = vadd.f32 %v397_v46, %v360_v45 }
 0x147   : > { %v398_v50 = vadd.f32 %v388_v49, %v357_v44  ;;  %v506_v44 = vmul.f32 %v485_v42, %v1216_v13 }
 0x148   : > { %v845_v52 = vmul.f32 -1.442695, %v400_v48  ;;  %v846_v54 = vmul.f32 -1.442695, %v401_v51 }
 0x149   : > { %v843_v53 = vmul.f32 -1.442695, %v398_v50 }
 0x14a   : > { %913 = vpow2.f32 %v845_v52 }
 0x14b   : > { %915 = vpow2.f32 %v843_v53 }
 0x14c   : > { %917 = vpow2.f32 %v846_v54 }
 0x14e   : > { %v391_v56 = vpop.xlane.xlu2 %390 }
 0x14f   : > { %v399_v57 = vadd.f32 %v391_v56, %v358_v55 }
 0x150   : > { %v914_v58 = vpop.eup %913 }
 0x151   : > { %v916_v59 = vpop.eup %915  ;;  %v1322_v60 = vadd.f32 1.0, %v914_v58  ;;  %v844_v61 = vmul.f32 -1.442695, %v399_v57 }
 0x152   : > { %v414_v62 = vadd.f32 1.0, %v916_v59  ;;  %v918_v63 = vpop.eup %917 }
 0x153   : > { %919 = vrcp.f32 %v1322_v60  ;;  %v1325_v0 = vadd.f32 1.0, %v918_v63  ;;  %v457_v36 = vand.u32 2147483647, %v1322_v60  ;;  %v459_v37 = vand.u32 2147483648, %v1322_v60 }
 0x154   : > { %921 = vrcp.f32 %v414_v62  ;;  %v429_v27 = vand.u32 2147483648, %v414_v62  ;;  %v427_v30 = vand.u32 2147483647, %v414_v62  ;;  %vm423_vm2 = vweird.f32 %v414_v62 }
 0x155   : > { %923 = vpow2.f32 %v844_v61  ;;  %vm453_vm4 = vweird.f32 %v1322_v60  ;;  %vm1350_vm6 = vcmp.eq.f32.partialorder %v457_v36, 8.507059e+37  ;;  %v460_v42 = vor.u32 1.1754944e-38, %v459_v37 }
 0x156   : > { %925 = vrcp.f32 %v1325_v0  ;;  %v500_v45 = vpop.permute.xlu2 %499  ;;  %v430_v47 = vor.u32 1.1754944e-38, %v429_v27  ;;  %vm428_vm5 = vcmp.eq.f32.partialorder %v427_v30, 8.507059e+37  ;;  %vm468_vm14 = vweird.f32 %v1325_v0 }
 0x157   : > { %v517_v55 = vmul.f32 %v500_v45, %v1229_v19 }
 0x158   : > { %v490_v32 = vpop.permute.xlu0 %489 }
 0x159   : > { %v1327_v4 = vpop.eup %919  ;;  %v507_v48 = vmul.f32 %v490_v32, %v1210_v11  ;;  %v508_v49 = vmul.f32 %v490_v32, %v1213_v12  ;;  %v509_v56 = vmul.f32 %v490_v32, %v1222_v15  ;;  %v510_v58 = vmul.f32 %v490_v32, %v1241_v23 }
 0x15a   : > { %v922_v9 = vpop.eup %921  ;;  %v449_v17 = vmul.f32 %v1327_v4, %v1322_v60  ;;  %vm454_vm7 = vweird.f32 %v1327_v4  ;;  %v511_v59 = vmul.f32 %v490_v32, %v1258_v33 }
 0x15b   : > { %v924_v10 = vpop.eup %923  ;;  %v419_v16 = vmul.f32 %v922_v9, %v414_v62  ;;  %vm424_vm1 = vweird.f32 %v922_v9  ;;  %v522_v63 = vadd.f32 %v507_v48, %v502_v28  ;;  %vm1366_vm8 = vmor %vm453_vm4, %vm454_vm7  ;;  %v540_v27 = vadd.f32 %v509_v56, %v504_v39 }
 0x15c   : > { %v1332_v18 = vadd.f32 1.0, %v924_v10  ;;  %v450_v25 = vsub.f32 1.0, %v449_v17  ;;  %v1336_v31 = vpop.eup %925  ;;  %vm425_vm3 = vmor %vm423_vm2, %vm424_vm1  ;;  %v549_v37 = vadd.f32 %v510_v58, %v505_v40 }
 0x15d   : > { %v420_v24 = vsub.f32 1.0, %v419_v16  ;;  %v495_v50 = vpop.permute.xlu1 %494  ;;  %v464_v51 = vmul.f32 %v1336_v31, %v1325_v0  ;;  %vm469_vm13 = vweird.f32 %v1336_v31 }
 0x15e   : > { %927 = vrcp.f32 %v1332_v18  ;;  %v451_v41 = vmul.f32 %v1327_v4, %v450_v25  ;;  %v512_v61 = vmul.f32 %v495_v50, %v1195_v5  ;;  %v513_v10 = vmul.f32 %v495_v50, %v1201_v7  ;;  %vm470_vm15 = vmor %vm468_vm14, %vm469_vm13 }
 0x15f   : > { %v421_v26 = vmul.f32 %v922_v9, %v420_v24  ;;  %v465_v16 = vsub.f32 1.0, %v464_v51  ;;  %v514_v17 = vmul.f32 %v495_v50, %v1204_v8  ;;  %v515_v30 = vmul.f32 %v495_v50, %v1219_v14 }
 0x160   : > { %v452_v57 = vadd.f32 %v1327_v4, %v451_v41  ;;  %v442_v32 = vand.u32 2147483647, %v1332_v18  ;;  %v523_v60 = vadd.f32 %v522_v63, %v512_v61  ;;  %vm438_vm10 = vweird.f32 %v1332_v18 }
 0x161   : > { %v422_v34 = vadd.f32 %v922_v9, %v421_v26  ;;  %v444_v26 = vand.u32 2147483648, %v1332_v18  ;;  %v466_v39 = vmul.f32 %v1336_v31, %v465_v16  ;;  %v550_v51 = vadd.f32 %v549_v37, %v515_v30 }
 0x162   : > { %v456_v28 = vsel %vm1366_vm8, %v1327_v4, %v452_v57  ;;  %vm443_vm12 = vcmp.eq.f32.partialorder %v442_v32, 8.507059e+37 }
 0x163   : > { %v426_v46 = vsel %vm425_vm3, %v922_v9, %v422_v34  ;;  %v531_v9 = vadd.f32 %v508_v49, %v503_v38  ;;  %v516_v34 = vmul.f32 %v495_v50, %v1238_v22  ;;  %v558_v38 = vadd.f32 %v511_v59, %v506_v44 }
 0x164   : > { %v928_v43 = vpop.eup %927  ;;  %v431_v52 = vsel %vm428_vm5, %v430_v47, %v426_v46  ;;  %v541_v46 = vadd.f32 %v540_v27, %v514_v17  ;;  %v461_v47 = vsel %vm1350_vm6, %v460_v42, %v456_v28  ;;  %v445_v4 = vor.u32 1.1754944e-38, %v444_v26 }
 0x165   : > { %v434_v54 = vmul.f32 %v928_v43, %v1332_v18  ;;  %671 = vperm.xlu2 %910, %v431_v52   ;;  %vm439_vm9 = vweird.f32 %v928_v43  ;;  %v532_v41 = vadd.f32 %v531_v9, %v513_v10  ;;  %v518_v49 = vmul.f32 %v500_v45, %v1232_v20 }
 0x166   : > { %vm440_vm11 = vmor %vm438_vm10, %vm439_vm9  ;;  %v519_v50 = vmul.f32 %v500_v45, %v1235_v21  ;;  %v524_v18 = vadd.f32 %v523_v60, %v517_v55  ;;  %v559_v40 = vadd.f32 %v558_v38, %v516_v34  ;;  %v520_v52 = vmul.f32 %v500_v45, %v1252_v29 }
 0x167   : > { %v435_v62 = vsub.f32 1.0, %v434_v54  ;;  %v533_v54 = vadd.f32 %v532_v41, %v518_v49  ;;  %v467_v56 = vadd.f32 %v1336_v31, %v466_v39  ;;  %v474_v42 = vand.u32 2147483648, %v1325_v0 }
 0x168   : > { %v542_v53 = vadd.f32 %v541_v46, %v519_v50  ;;  %v551_v57 = vadd.f32 %v550_v51, %v520_v52  ;;  %v472_v55 = vand.u32 2147483647, %v1325_v0  ;;  %v525_v58 = vrot.slane %v524_v18, 4 }
 0x169   : > { %v436_v25 = vmul.f32 %v928_v43, %v435_v62  ;;  %v534_v61 = vrot.slane %v533_v54, 4  ;;  %v471_v62 = vsel %vm470_vm15, %v1336_v31, %v467_v56  ;;  %v475_v9 = vor.u32 1.1754944e-38, %v474_v42 }
 0x16a   : > { %v543_v63 = vrot.slane %v542_v53, 4  ;;  %v552_v10 = vrot.slane %v551_v57, 4  ;;  %vm473_vm0 = vcmp.eq.f32.partialorder %v472_v55, 8.507059e+37  ;;  %v526_v16 = vadd.f32 %v525_v58, %v524_v18 }
 0x16b   : > { %v437_v36 = vadd.f32 %v928_v43, %v436_v25  ;;  %v476_v17 = vsel %vm473_vm0, %v475_v9, %v471_v62  ;;  %v535_v24 = vadd.f32 %v534_v61, %v533_v54  ;;  %v568_v49 = vstv %s567_s10 }
 0x16c   : > { %v544_v25 = vadd.f32 %v543_v63, %v542_v53  ;;  %v553_v26 = vadd.f32 %v552_v10, %v551_v57  ;;  %v527_v27 = vrot.slane %v526_v16, 2 }
 0x16d   : > { %v441_v48 = vsel %vm440_vm11, %v928_v43, %v437_v36  ;;  %681 = vperm.xlu2 %910, %v461_v47   ;;  %v521_v43 = vmul.f32 %v500_v45, %v1262_v35  ;;  %v536_v0 = vrot.slane %v535_v24, 2 }
 0x16e   : > { %v446_v44 = vsel %vm443_vm12, %v445_v4, %v441_v48  ;;  %v545_v28 = vrot.slane %v544_v25, 2  ;;  %v554_v32 = vrot.slane %v553_v26, 2  ;;  %v528_v34 = vadd.f32 %v527_v27, %v526_v16 }
 0x16f   : > { %676 = vperm.xlu1 %912, %v446_v44   ;;  %v560_v59 = vadd.f32 %v559_v40, %v521_v43  ;;  %v537_v31 = vadd.f32 %v536_v0, %v535_v24 }
 0x170   : > { %v546_v36 = vadd.f32 %v545_v28, %v544_v25  ;;  %v555_v37 = vadd.f32 %v554_v32, %v553_v26  ;;  %v529_v38 = vrot.slane %v528_v34, 1 }
 0x171   : > { %v561_v45 = vrot.slane %v560_v59, 4  ;;  %v538_v39 = vrot.slane %v537_v31, 1 }
 0x172   : > { %v547_v46 = vrot.slane %v546_v36, 1  ;;  %v556_v47 = vrot.slane %v555_v37, 1  ;;  %v530_v48 = vadd.f32 %v529_v38, %v528_v34 }
 0x173   : > { %v562_v30 = vadd.f32 %v561_v45, %v560_v59  ;;  %v539_v51 = vadd.f32 %v538_v39, %v537_v31 }
 0x174   : > { %v548_v50 = vadd.f32 %v547_v46, %v546_v36  ;;  %v557_v18 = vadd.f32 %v556_v47, %v555_v37  ;;  %v569_v44 = vadd.f32 %v568_v49, %v530_v48 }
 0x175   : > { %v563_v60 = vrot.slane %v562_v30, 2  ;;  %v570_v52 = vadd.f32 %v568_v49, %v539_v51 }
 0x176   : > { %v571_v54 = vadd.f32 %v568_v49, %v548_v50  ;;  %v572_v56 = vadd.f32 %v568_v49, %v557_v18  ;;  %v847_v53 = vmul.f32 -1.442695, %v569_v44 }
 0x177   : > { %686 = vperm.xlu1 %912, %v476_v17   ;;  %v564_v41 = vadd.f32 %v563_v60, %v562_v30  ;;  %v848_v42 = vmul.f32 -1.442695, %v570_v52 }
 0x178   : > { %v849_v57 = vmul.f32 -1.442695, %v571_v54  ;;  %v850_v55 = vmul.f32 -1.442695, %v572_v56  ;;  %929 = vpow2.f32 %v847_v53 }
 0x179   : > { %v565_v4 = vrot.slane %v564_v41, 1  ;;  %931 = vpow2.f32 %v848_v42 }
 0x17a   : > { %933 = vpow2.f32 %v849_v57 }
 0x17b   : > { %v566_v40 = vadd.f32 %v565_v4, %v564_v41  ;;  %935 = vpow2.f32 %v850_v55 }
 0x17d   : > { %v573_v43 = vadd.f32 %v568_v49, %v566_v40 }
 0x17e   : > { %v930_v59 = vpop.eup %929 }
 0x17f   : > { %v851_v58 = vmul.f32 -1.442695, %v573_v43  ;;  %v932_v61 = vpop.eup %931  ;;  %v589_v9 = vadd.f32 1.0, %v930_v59 }
 0x180   : > { %v934_v62 = vpop.eup %933  ;;  %v1391_v16 = vadd.f32 1.0, %v932_v61 }
 0x181   : > { %937 = vpow2.f32 %v851_v58  ;;  %v936_v63 = vpop.eup %935  ;;  %v1393_v45 = vadd.f32 1.0, %v934_v62  ;;  %vm599_vm2 = vweird.f32 %v589_v9  ;;  %v603_v51 = vand.u32 2147483647, %v589_v9 }
 0x182   : > { %v1395_v17 = vadd.f32 1.0, %v936_v63  ;;  %939 = vrcp.f32 %v589_v9  ;;  %v605_v50 = vand.u32 2147483648, %v589_v9  ;;  %vm614_vm4 = vweird.f32 %v1391_v16 }
 0x183   : > { %941 = vrcp.f32 %v1391_v16  ;;  %v618_v18 = vand.u32 2147483647, %v1391_v16  ;;  %v620_v40 = vand.u32 2147483648, %v1391_v16  ;;  %vm629_vm7 = vweird.f32 %v1393_v45 }
 0x184   : > { %943 = vrcp.f32 %v1393_v45  ;;  %v635_v55 = vand.u32 2147483648, %v1393_v45  ;;  %vm644_vm12 = vweird.f32 %v1395_v17  ;;  %v650_v58 = vand.u32 2147483648, %v1395_v17 }
 0x185   : > { %945 = vrcp.f32 %v1395_v17  ;;  %v633_v61 = vand.u32 2147483647, %v1393_v45  ;;  %v648_v63 = vand.u32 2147483647, %v1395_v17  ;;  %vm604_vm15 = vcmp.eq.f32.partialorder %v603_v51, 8.507059e+37 }
 0x186   : > { %vm619_vm0 = vcmp.eq.f32.partialorder %v618_v18, 8.507059e+37 }
 0x187   : > { %v938_v10 = vpop.eup %937 }
 0x188   : > { %v1397_v24 = vadd.f32 1.0, %v938_v10  ;;  %v1403_v25 = vpop.eup %939 }
 0x189   : > { %v1405_v26 = vpop.eup %941  ;;  %v595_v28 = vmul.f32 %v1403_v25, %v589_v9  ;;  %vm600_vm1 = vweird.f32 %v1403_v25 }
 0x18a   : > { %947 = vrcp.f32 %v1397_v24  ;;  %v1407_v27 = vpop.eup %943  ;;  %v610_v32 = vmul.f32 %v1405_v26, %v1391_v16  ;;  %vm615_vm3 = vweird.f32 %v1405_v26  ;;  %vm1434_vm6 = vmor %vm599_vm2, %vm600_vm1  ;;  %v665_v59 = vand.u32 2147483648, %v1397_v24 }
 0x18b   : > { %v1409_v30 = vpop.eup %945  ;;  %v625_v34 = vmul.f32 %v1407_v27, %v1393_v45  ;;  %v596_v36 = vsub.f32 1.0, %v595_v28  ;;  %vm630_vm5 = vweird.f32 %v1407_v27  ;;  %vm1442_vm10 = vmor %vm614_vm4, %vm615_vm3  ;;  %vm659_vm14 = vweird.f32 %v1397_v24 }
 0x18c   : > { %v640_v60 = vmul.f32 %v1409_v30, %v1395_v17  ;;  %v611_v37 = vsub.f32 1.0, %v610_v32  ;;  %vm645_vm8 = vweird.f32 %v1409_v30  ;;  %vm1449_vm11 = vmor %vm629_vm7, %vm630_vm5  ;;  %v663_v9 = vand.u32 2147483647, %v1397_v24 }
 0x18d   : > { %v626_v38 = vsub.f32 1.0, %v625_v34  ;;  %v597_v46 = vmul.f32 %v1403_v25, %v596_v36  ;;  %vm1458_vm13 = vmor %vm644_vm12, %vm645_vm8  ;;  %v606_v16 = vor.u32 1.1754944e-38, %v605_v50  ;;  %v621_v32 = vor.u32 1.1754944e-38, %v620_v40 }
 0x18e   : > { %v641_v41 = vsub.f32 1.0, %v640_v60  ;;  %v612_v47 = vmul.f32 %v1405_v26, %v611_v37  ;;  %v636_v34 = vor.u32 1.1754944e-38, %v635_v55  ;;  %v651_v60 = vor.u32 1.1754944e-38, %v650_v58 }
 0x18f   : > { %v627_v48 = vmul.f32 %v1407_v27, %v626_v38  ;;  %v598_v44 = vadd.f32 %v1403_v25, %v597_v46  ;;  %vm634_vm2 = vcmp.eq.f32.partialorder %v633_v61, 8.507059e+37  ;;  %vm649_vm3 = vcmp.eq.f32.partialorder %v648_v63, 8.507059e+37 }
 0x190   : > { %v1411_v0 = vpop.eup %947  ;;  %v642_v4 = vmul.f32 %v1409_v30, %v641_v41  ;;  %v613_v54 = vadd.f32 %v1405_v26, %v612_v47  ;;  %vm664_vm4 = vcmp.eq.f32.partialorder %v663_v9, 8.507059e+37 }
 0x191   : > { %v655_v31 = vmul.f32 %v1411_v0, %v1397_v24  ;;  %vm660_vm9 = vweird.f32 %v1411_v0  ;;  %v628_v43 = vadd.f32 %v1407_v27, %v627_v48  ;;  %v602_v10 = vsel %vm1434_vm6, %v1403_v25, %v598_v44 }
 0x192   : > { %v643_v53 = vadd.f32 %v1409_v30, %v642_v4  ;;  %vm1470_vm1 = vmor %vm659_vm14, %vm660_vm9  ;;  %v617_v17 = vsel %vm1442_vm10, %v1405_v26, %v613_v54  ;;  %v607_v36 = vsel %vm604_vm15, %v606_v16, %v602_v10 }
 0x193   : > { %v656_v39 = vsub.f32 1.0, %v655_v31  ;;  %v632_v24 = vsel %vm1449_vm11, %v1407_v27, %v628_v43  ;;  %v666_v31 = vor.u32 1.1754944e-38, %v665_v59  ;;  %v622_v26 = vsel %vm619_vm0, %v621_v32, %v617_v17 }
 0x194   : > { %v647_v25 = vsel %vm1458_vm13, %v1409_v30, %v643_v53  ;;  %v637_v37 = vsel %vm634_vm2, %v636_v34, %v632_v24 }
 0x195   : > { %v657_v49 = vmul.f32 %v1411_v0, %v656_v39  ;;  %v652_v27 = vsel %vm649_vm3, %v651_v60, %v647_v25 }
 0x197   : > { %v658_v42 = vadd.f32 %v1411_v0, %v657_v49 }
 0x199   : > { %v662_v28 = vsel %vm1470_vm1, %v1411_v0, %v658_v42 }
 0x19a   : > { %v667_v38 = vsel %vm664_vm4, %v666_v31, %v662_v28 }
 0x1bf   : > { %v672_v41 = vpop.permute.xlu2 %671 }
 0x1c0   : > { %v689_v39 = vadd.f32 %v672_v41, %v607_v36  ;;  %v690_v30 = vadd.f32 %v672_v41, %v622_v26  ;;  %v691_v46 = vadd.f32 %v672_v41, %v637_v37  ;;  %v692_v47 = vadd.f32 %v672_v41, %v652_v27 }
 0x1c1   : > { %v693_v48 = vadd.f32 %v672_v41, %v667_v38 }
 0x1c2   : > { %v709_v0 = vmul.f32 %v689_v39, %v1184_v1  ;;  %v710_v4 = vmul.f32 %v690_v30, %v1187_v2  ;;  %v711_v49 = vmul.f32 %v691_v46, %v1190_v3  ;;  %v712_v51 = vmul.f32 %v692_v47, %v1198_v6 }
 0x1c3   : > { %v713_v50 = vmul.f32 %v693_v48, %v1216_v13 }
 0x1c4   : > { %729 = vst [vmem:[%s1493_s16] sm:$0xff] %v709_v0 }
 0x1c5   : > { %730 = vst [vmem:[%s1493_s16 + $0x8] sm:$0xff] %v710_v4 }
 0x1c6   : > { %731 = vst [vmem:[%s1493_s16 + $0x10] sm:$0xff] %v711_v49 }
 0x1c7   : > { %732 = vst [vmem:[%s1493_s16 + $0x18] sm:$0xff] %v712_v51  ;;  %v682_v1 = vpop.permute.xlu2 %681 }
 0x1c8   : > { %733 = vst [vmem:[%s1493_s16 + $0x20] sm:$0xff] %v713_v50  ;;  %v699_v2 = vadd.f32 %v682_v1, %v607_v36  ;;  %v700_v3 = vadd.f32 %v682_v1, %v622_v26  ;;  %v701_v6 = vadd.f32 %v682_v1, %v637_v37  ;;  %v702_v13 = vadd.f32 %v682_v1, %v652_v27 }
 0x1c9   : > { %v703_v18 = vadd.f32 %v682_v1, %v667_v38 }
 0x1ca   : > { %v719_v40 = vmul.f32 %v699_v2, %v1195_v5  ;;  %v720_v44 = vmul.f32 %v700_v3, %v1201_v7  ;;  %v721_v52 = vmul.f32 %v701_v6, %v1204_v8  ;;  %v722_v54 = vmul.f32 %v702_v13, %v1219_v14 }
 0x1cb   : > { %v723_v56 = vmul.f32 %v703_v18, %v1238_v22 }
 0x1cc   : > { %739 = vst [vmem:[%s1493_s16 + $0x50] sm:$0xff] %v719_v40 }
 0x1cd   : > { %740 = vst [vmem:[%s1493_s16 + $0x58] sm:$0xff] %v720_v44 }
 0x1ce   : > { %741 = vst [vmem:[%s1493_s16 + $0x60] sm:$0xff] %v721_v52 }
 0x1cf   : > { %742 = vst [vmem:[%s1493_s16 + $0x68] sm:$0xff] %v722_v54 }
 0x1d0   : > { %743 = vst [vmem:[%s1493_s16 + $0x70] sm:$0xff] %v723_v56 }
 0x1e1   : > { %v677_v43 = vpop.permute.xlu1 %676 }
 0x1e2   : > { %v694_v5 = vadd.f32 %v677_v43, %v607_v36  ;;  %v695_v7 = vadd.f32 %v677_v43, %v622_v26  ;;  %v696_v53 = vadd.f32 %v677_v43, %v637_v37  ;;  %v697_v8 = vadd.f32 %v677_v43, %v652_v27 }
 0x1e3   : > { %v698_v42 = vadd.f32 %v677_v43, %v667_v38 }
 0x1e4   : > { %v714_v14 = vmul.f32 %v694_v5, %v1210_v11  ;;  %v715_v22 = vmul.f32 %v695_v7, %v1213_v12  ;;  %v716_v57 = vmul.f32 %v696_v53, %v1222_v15  ;;  %v717_v55 = vmul.f32 %v697_v8, %v1241_v23 }
 0x1e5   : > { %v718_v58 = vmul.f32 %v698_v42, %v1258_v33 }
 0x1e6   : > { %734 = vst [vmem:[%s1493_s16 + $0x28] sm:$0xff] %v714_v14 }
 0x1e7   : > { %735 = vst [vmem:[%s1493_s16 + $0x30] sm:$0xff] %v715_v22 }
 0x1e8   : > { %736 = vst [vmem:[%s1493_s16 + $0x38] sm:$0xff] %v716_v57 }
 0x1e9   : > { %737 = vst [vmem:[%s1493_s16 + $0x40] sm:$0xff] %v717_v55  ;;  %v687_v59 = vpop.permute.xlu1 %686 }
 0x1ea   : > { %738 = vst [vmem:[%s1493_s16 + $0x48] sm:$0xff] %v718_v58  ;;  %v704_v61 = vadd.f32 %v687_v59, %v607_v36  ;;  %v705_v11 = vadd.f32 %v687_v59, %v622_v26  ;;  %v706_v12 = vadd.f32 %v687_v59, %v637_v37  ;;  %v707_v15 = vadd.f32 %v687_v59, %v652_v27 }
 0x1eb   : > { %v708_v23 = vadd.f32 %v687_v59, %v667_v38 }
 0x1ec   : > { %v724_v33 = vmul.f32 %v704_v61, %v1229_v19  ;;  %v725_v62 = vmul.f32 %v705_v11, %v1232_v20  ;;  %v726_v63 = vmul.f32 %v706_v12, %v1235_v21  ;;  %v727_v9 = vmul.f32 %v707_v15, %v1252_v29 }
 0x1ed   : > { %v728_v10 = vmul.f32 %v708_v23, %v1262_v35 }
 0x1ee   : > { %744 = vst [vmem:[%s1493_s16 + $0x78] sm:$0xff] %v724_v33 }
 0x1ef   : > { %745 = vst [vmem:[%s1493_s16 + $0x80] sm:$0xff] %v725_v62 }
 0x1f0   : > { %746 = vst [vmem:[%s1493_s16 + $0x88] sm:$0xff] %v726_v63 }
 0x1f1   : > { %747 = vst [vmem:[%s1493_s16 + $0x90] sm:$0xff] %v727_v9 }
 0x1f2   : > { %748 = vst [vmem:[%s1493_s16 + $0x98] sm:$0xff] %v728_v10 }
 0x1f3   : > { %1006 = shalt.err (!%p1003_p7)
}
 0x1f4   : > { %s1050_s20 = smov 640   ;;  %s1051_s10 = smov 40  }
 0x1f5   : > { %861 = dma.vmem_to_hbm [thread:$0]  (%p1141_p11), %s763_s6, 2560, %s765_s17, %s750_s23, %s1050_s20, %s1050_s20, %s1051_s10  }
 0x1f6 PF: > { %s779_s16 = sand.u32 1, %s1033_s26   ;;  %p868_p8 = pnand %p840_p9, %p1145_p12 }
 0x1f7   : > { %s780_s11 = scalar_lea.sflag [#allocation5], %s779_s16 }
 0x1f8   : > { %p869_p10 = pneg %p868_p8 }
 0x1fa   : > { %1028 = dma.done.wait (%p869_p10), %s780_s11, 2560  }
 0x1fb   : > { %1030 = vsyncadd (%p869_p10), %s780_s11, 4294964736  ;;  %s1591_s18 = sld [smem:[#allocation9_spill]]  ;;  %p21_p0 = scmp.ge.s32.totalorder %s1120_s8, 4  }
 0x1fc   : > { %s1592_s26 = smov %s1037_s27  ;;  %s1593_s27 = smov %s1041_s28 }
 0x1fd   : > { %s1595_s29 = smov %s1120_s8  ;;  %23 = sbr.rel (!%p21_p0) target bundleno = 7 (0x7), region = 93 }
 0x201   : > { %s1594_s28 = smov %s1591_s18 }
 0x202   :  { %786 = vsyncpa [#allocation4], 1 }
 0x203   :  { %788 = vsyncpa [#allocation4 + $0x1], 1 }
 0x204   :  { %789 = vsyncpa [#allocation5], 1 }
 0x205   :  { %791 = vsyncpa [#allocation5 + $0x1], 1 }

</bundles_post_ra>
